<compile_context>
chip_gen: v7x
topology: tpu7x:2x2x1
jax: 0.10.0
libtpu: 0.0.40
codegen_flags: <defaults>
</compile_context>

<pallas_src>
import jax
import jax.numpy as jnp
from jax.experimental import pallas as pl
from jax.experimental.pallas import tpu as pltpu


def _round_up(n, m):
    return (n + m - 1) // m * m


def mlp_kernel(x_ref, w1_ref, b1_ref, w2_ref, b2_ref, o_ref):
    # fc1 (MXU, f32 accumulate) + bias + ReLU, then fc2, all in one invocation.
    h = jnp.dot(x_ref[...], w1_ref[...], preferred_element_type=jnp.float32)
    h = jnp.maximum(h + b1_ref[...], 0.0)
    out = jnp.dot(h.astype(w2_ref.dtype), w2_ref[...],
                  preferred_element_type=jnp.float32) + b2_ref[...]
    o_ref[...] = out.astype(o_ref.dtype)


def net_forward(x, w1, b1, w2, b2, *, block_b=512):
    """x: (B, 784) f32; w1: (784, 500); b1: (500,); w2: (500, 10); b2: (10,).

    Returns (B, 10) f32, matching PyTorch's fc2(relu(fc1(x))).
    Weights are stored (in_features, out_features) so the kernel computes
    x @ W + b (== x @ W_torch.T + b).
    """
    B, in_f = x.shape
    hid = w1.shape[1]
    n_cls = w2.shape[1]

    # Pad every dim to lane/sublane-friendly sizes (multiples of 128 / 8).
    in_p = _round_up(in_f, 128)     # 784 -> 896
    hid_p = _round_up(hid, 128)     # 500 -> 512
    cls_p = _round_up(n_cls, 128)   # 10  -> 128 (lane-dense output)

    tb = min(block_b, _round_up(B, 8))   # batch tile, multiple of 8
    bp = _round_up(B, tb)                # padded batch, multiple of tb

    # bf16 weights/activations (MXU-native), f32 biases. Zero padding is exact.
    xp = jnp.zeros((bp, in_p), jnp.bfloat16).at[:B, :in_f].set(x.astype(jnp.bfloat16))
    w1p = jnp.zeros((in_p, hid_p), jnp.bfloat16).at[:in_f, :hid].set(w1.astype(jnp.bfloat16))
    b1p = jnp.zeros((1, hid_p), jnp.float32).at[:, :hid].set(b1.reshape(1, -1))
    w2p = jnp.zeros((hid_p, cls_p), jnp.bfloat16).at[:hid, :n_cls].set(w2.astype(jnp.bfloat16))
    b2p = jnp.zeros((1, cls_p), jnp.float32).at[:, :n_cls].set(b2.reshape(1, -1))

    grid = (bp // tb,)
    flops = 2 * bp * (in_p * hid_p + hid_p * cls_p)
    bytes_accessed = (xp.size * 2 + w1p.size * 2 + w2p.size * 2
                      + b1p.size * 4 + b2p.size * 4 + bp * cls_p * 4)

    out_p = pl.pallas_call(
        mlp_kernel,
        out_shape=jax.ShapeDtypeStruct((bp, cls_p), jnp.float32),
        grid=grid,
        in_specs=[
            pl.BlockSpec((tb, in_p), lambda i: (i, 0)),      # x tiles (double-buffered)
            pl.BlockSpec((in_p, hid_p), lambda i: (0, 0)),   # w1 resident in VMEM
            pl.BlockSpec((1, hid_p), lambda i: (0, 0)),      # b1 resident
            pl.BlockSpec((hid_p, cls_p), lambda i: (0, 0)),  # w2 resident
            pl.BlockSpec((1, cls_p), lambda i: (0, 0)),      # b2 resident
        ],
        out_specs=pl.BlockSpec((tb, cls_p), lambda i: (i, 0)),
        compiler_params=pltpu.CompilerParams(
            dimension_semantics=("parallel",),        # megacore sharding on v7x
            vmem_limit_bytes=64 * 1024 * 1024,
        ),
        cost_estimate=pl.CostEstimate(
            flops=flops, transcendentals=0, bytes_accessed=bytes_accessed),
    )(xp, w1p, b1p, w2p, b2p)

    # Strip the batch / class padding.
    return out_p[:B, :n_cls]


def init_params(key, input_size=784, hidden_size=500, num_classes=10):
    """Deterministic init mirroring torch.nn.Linear's U(-1/sqrt(fan_in), 1/sqrt(fan_in))."""
    k1, k2, k3, k4 = jax.random.split(key, 4)
    bound1 = 1.0 / (input_size ** 0.5)
    bound2 = 1.0 / (hidden_size ** 0.5)
    # Stored as (in, out) so the kernel does x @ W.
    w1 = jax.random.uniform(k1, (input_size, hidden_size), jnp.float32, -bound1, bound1)
    b1 = jax.random.uniform(k2, (hidden_size,), jnp.float32, -bound1, bound1)
    w2 = jax.random.uniform(k3, (hidden_size, num_classes), jnp.float32, -bound2, bound2)
    b2 = jax.random.uniform(k4, (num_classes,), jnp.float32, -bound2, bound2)
    return w1, b1, w2, b2


if __name__ == "__main__":
    key = jax.random.PRNGKey(0)
    kx, kp = jax.random.split(key)

    batch, input_size, hidden_size, num_classes = 8, 784, 500, 10
    x = jax.random.normal(kx, (batch, input_size), jnp.float32)
    w1, b1, w2, b2 = init_params(kp, input_size, hidden_size, num_classes)

    out = net_forward(x, w1, b1, w2, b2)
    jax.block_until_ready(out)

    # Sanity check against a plain-JAX reference using the same bf16-rounded
    # weights/activations (f32 accumulation), matching the kernel's numerics.
    xb = x.astype(jnp.bfloat16).astype(jnp.float32)
    w1b = w1.astype(jnp.bfloat16).astype(jnp.float32)
    w2b = w2.astype(jnp.bfloat16).astype(jnp.float32)
    ref = jnp.maximum(xb @ w1b + b1[None, :], 0.0) @ w2b + b2[None, :]

    assert out.shape == (batch, num_classes)
    assert jnp.allclose(out, ref, atol=2e-2, rtol=2e-2), (
        f"max abs err = {jnp.max(jnp.abs(out - ref))}")

    print("KERNEL_OK")
</pallas_src>

<mosaic_0001>
module attributes {stable_mosaic.version = 11 : i64} {
  func.func @mlp_kernel(%arg0: i32, %arg1: memref<8x896xbf16, #tpu.memory_space<vmem>>, %arg2: memref<896x512xbf16, #tpu.memory_space<vmem>>, %arg3: memref<1x512xf32, #tpu.memory_space<vmem>>, %arg4: memref<512x128xbf16, #tpu.memory_space<vmem>>, %arg5: memref<1x128xf32, #tpu.memory_space<vmem>>, %arg6: memref<8x128xf32, #tpu.memory_space<vmem>>) attributes {dimension_semantics = [#tpu.dimension_semantics<parallel>], iteration_bounds = array<i64: 1>, scalar_prefetch = 0 : i64, scratch_operands = 0 : i64, tpu.core_type = #tpu.core_type<tc>, window_params = [{transform_indices = @transform_0, window_bounds = array<i64: 8, 896>}, {pipeline_mode = #tpu.pipeline_mode<synchronous>, transform_indices = @transform_1, window_bounds = array<i64: 896, 512>}, {pipeline_mode = #tpu.pipeline_mode<synchronous>, transform_indices = @transform_2, window_bounds = array<i64: 1, 512>}, {pipeline_mode = #tpu.pipeline_mode<synchronous>, transform_indices = @transform_3, window_bounds = array<i64: 512, 128>}, {pipeline_mode = #tpu.pipeline_mode<synchronous>, transform_indices = @transform_4, window_bounds = array<i64: 1, 128>}, {transform_indices = @transform_5, window_bounds = array<i64: 8, 128>}]} {
    %c0 = arith.constant 0 : index
    %c0_0 = arith.constant 0 : index
    %0 = vector.load %arg1[%c0, %c0_0] : memref<8x896xbf16, #tpu.memory_space<vmem>>, vector<8x896xbf16>
    %c0_1 = arith.constant 0 : index
    %c0_2 = arith.constant 0 : index
    %1 = vector.load %arg2[%c0_1, %c0_2] : memref<896x512xbf16, #tpu.memory_space<vmem>>, vector<896x512xbf16>
    %cst = arith.constant dense<0.000000e+00> : vector<8x512xf32>
    %2 = tpu.matmul %0, %1, %cst {dimension_numbers = #tpu.dot_dimension_numbers<[1], [0], [0], [1], [0, 0, 1, 1], [], []>} : vector<8x896xbf16>, vector<896x512xbf16>, vector<8x512xf32> -> vector<8x512xf32>
    %c0_3 = arith.constant 0 : index
    %c0_4 = arith.constant 0 : index
    %3 = vector.load %arg3[%c0_3, %c0_4] : memref<1x512xf32, #tpu.memory_space<vmem>>, vector<1x512xf32>
    %4 = vector.broadcast %3 : vector<1x512xf32> to vector<8x512xf32>
    %5 = arith.addf %2, %4 : vector<8x512xf32>
    %cst_5 = arith.constant 0.000000e+00 : f32
    %6 = vector.broadcast %cst_5 : f32 to vector<8x512xf32>
    %7 = arith.maximumf %5, %6 : vector<8x512xf32>
    %8 = arith.truncf %7 : vector<8x512xf32> to vector<8x512xbf16>
    %c0_6 = arith.constant 0 : index
    %c0_7 = arith.constant 0 : index
    %9 = vector.load %arg4[%c0_6, %c0_7] : memref<512x128xbf16, #tpu.memory_space<vmem>>, vector<512x128xbf16>
    %cst_8 = arith.constant dense<0.000000e+00> : vector<8x128xf32>
    %10 = tpu.matmul %8, %9, %cst_8 {dimension_numbers = #tpu.dot_dimension_numbers<[1], [0], [0], [1], [0, 0, 1, 1], [], []>} : vector<8x512xbf16>, vector<512x128xbf16>, vector<8x128xf32> -> vector<8x128xf32>
    %c0_9 = arith.constant 0 : index
    %c0_10 = arith.constant 0 : index
    %11 = vector.load %arg5[%c0_9, %c0_10] : memref<1x128xf32, #tpu.memory_space<vmem>>, vector<1x128xf32>
    %12 = vector.broadcast %11 : vector<1x128xf32> to vector<8x128xf32>
    %13 = arith.addf %10, %12 : vector<8x128xf32>
    %c0_11 = arith.constant 0 : index
    %c0_12 = arith.constant 0 : index
    %14 = vector.load %arg6[%c0_11, %c0_12] : memref<8x128xf32, #tpu.memory_space<vmem>>, vector<8x128xf32>
    tpu.vector_store %arg6[%c0_11, %c0_12], %13 {strides = array<i32>} : memref<8x128xf32, #tpu.memory_space<vmem>>, vector<8x128xf32>,
    return
  }
  func.func @transform_0(%arg0: i32) -> (i32, i32) {
    %c0_i32 = arith.constant 0 : i32
    %c0_i32_0 = arith.constant 0 : i32
    return %arg0, %c0_i32 : i32, i32
  }
  func.func @transform_1(%arg0: i32) -> (i32, i32) {
    %c0_i32 = arith.constant 0 : i32
    %c0_i32_0 = arith.constant 0 : i32
    %c0_i32_1 = arith.constant 0 : i32
    return %c0_i32, %c0_i32_0 : i32, i32
  }
  func.func @transform_2(%arg0: i32) -> (i32, i32) {
    %c0_i32 = arith.constant 0 : i32
    %c0_i32_0 = arith.constant 0 : i32
    %c0_i32_1 = arith.constant 0 : i32
    return %c0_i32, %c0_i32_0 : i32, i32
  }
  func.func @transform_3(%arg0: i32) -> (i32, i32) {
    %c0_i32 = arith.constant 0 : i32
    %c0_i32_0 = arith.constant 0 : i32
    %c0_i32_1 = arith.constant 0 : i32
    return %c0_i32, %c0_i32_0 : i32, i32
  }
  func.func @transform_4(%arg0: i32) -> (i32, i32) {
    %c0_i32 = arith.constant 0 : i32
    %c0_i32_0 = arith.constant 0 : i32
    %c0_i32_1 = arith.constant 0 : i32
    return %c0_i32, %c0_i32_0 : i32, i32
  }
  func.func @transform_5(%arg0: i32) -> (i32, i32) {
    %c0_i32 = arith.constant 0 : i32
    %c0_i32_0 = arith.constant 0 : i32
    return %arg0, %c0_i32 : i32, i32
  }
}

</mosaic_0001>

<bundles_post_ra>
// kernel: tpu_custom_call.1
= control target key start
LH: loop header
LB: loop body
LE: loop exit
PB: predicated region body
PF: predicated region fallthrough
CT: control target
= control target key end

     0   :  { %10 = vsyncpa [#allocation3], 0  ;;  %s3163_s0 = inlined_call_operand.hbm [shape: bf16[8,896], index: 0, kind: input, shape index: {}]   ;;  %s3164_s1 = inlined_call_operand.hbm [shape: bf16[896,512], index: 1, kind: input, shape index: {}]   ;;  %s3165_s2 = inlined_call_operand.hbm [shape: f32[1,512], index: 2, kind: input, shape index: {}]   ;;  %s3166_s3 = inlined_call_operand.hbm [shape: bf16[512,128], index: 3, kind: input, shape index: {}]   ;;  %s3167_s4 = inlined_call_operand.hbm [shape: f32[1,128], index: 4, kind: input, shape index: {}]   ;;  %s3168_s5 = inlined_call_operand.hbm [shape: f32[8,128], index: 5, kind: output, shape index: {}]  }
   0x1   :  { %11 = vsyncpa [#allocation6], 0 }
   0x2   :  { %12 = vsyncpa [#allocation9], 0 }
   0x3   :  { %13 = vsyncpa [#allocation4], 0  ;;  %s3038_s18 = smov [#allocation5]   ;;  %s2898_s22 = scalar_lea.hbm %s3164_s1, 28672 }
   0x4   :  { %s29_s19 = sshll.u32 %s3038_s18, 4  ;;  %p2899_p0 = scmp.ne.s32.totalorder %s3164_s1, %s2898_s22  ;;  %s30_s19 = int_to_ptr.vmem [resolvable:$true] %s29_s19 }
   0x5   :  { %p2902_p1 = scmp.lt.u32.totalorder %s2898_s22, %s3164_s1 }
   0x7   :  { %p2904_p2 = pnand %p2902_p1, %p2899_p0 }
   0x9   :  { %2907 = shalt.err (!%p2904_p2)
}
   0xa   :  { %s2908_s27 = scalar_lea.vmem %s30_s19, 28672  ;;  %p2913_p4 = scmp.lt.s32.totalorder %s30_s19, %s30_s19 }
   0xb   :  { %p2909_p3 = scmp.ne.s32.totalorder %s30_s19, %s2908_s27  ;;  %p2914_p5 = scmp.lt.s32.totalorder %s2908_s27, %s2908_s27 }
   0xd   :  { %p2915_p6 = por %p2914_p5, %p2913_p4 }
   0xf   :  { %p2916_p7 = pnand %p2915_p6, %p2909_p3 }
  0x11   :  { %2919 = shalt.err (!%p2916_p7)
}
  0x12   :  { %s3039_s28 = smov 256   ;;  %s3040_s29 = smov 16  }
  0x13   :  { %35 = dma.hbm_to_vmem [thread:$0]  %s3164_s1, 28672, %s30_s19, [#allocation6], %s3039_s28, %s3039_s28, %s3040_s29  }
  0x14   :  { %s3041_s7 = smov [#allocation8]   ;;  %s2920_s11 = scalar_lea.hbm %s3166_s3, 4096 }
  0x15   :  { %s51_s8 = sshll.u32 %s3041_s7, 4  ;;  %p2921_p8 = scmp.ne.s32.totalorder %s3166_s3, %s2920_s11  ;;  %s52_s8 = int_to_ptr.vmem [resolvable:$true] %s51_s8 }
  0x16   :  { %p2924_p9 = scmp.lt.u32.totalorder %s2920_s11, %s3166_s3 }
  0x18   :  { %p2926_p10 = pnand %p2924_p9, %p2921_p8 }
  0x1a   :  { %2929 = shalt.err (!%p2926_p10)
}
  0x1b   :  { %s2930_s16 = scalar_lea.vmem %s52_s8, 4096  ;;  %p2935_p12 = scmp.lt.s32.totalorder %s52_s8, %s52_s8 }
  0x1c   :  { %p2931_p11 = scmp.ne.s32.totalorder %s52_s8, %s2930_s16  ;;  %p2936_p13 = scmp.lt.s32.totalorder %s2930_s16, %s2930_s16 }
  0x1e   :  { %p2937_p0 = por %p2936_p13, %p2935_p12 }
  0x20   :  { %p2938_p1 = pnand %p2937_p0, %p2931_p11 }
  0x22   :  { %2941 = shalt.err (!%p2938_p1)
}
  0x23   :  { %s3042_s1 = smov 64   ;;  %s3043_s17 = smov 4  }
  0x24   :  { %57 = dma.hbm_to_vmem [thread:$0]  %s3166_s3, 4096, %s52_s8, [#allocation9], %s3042_s1, %s3042_s1, %s3043_s17  }
  0x25   :  { %s3044_s20 = smov [#allocation2]   ;;  %s3045_s22 = smov [#allocation7]  }
  0x26   :  { %s20_s21 = sshll.u32 %s3044_s20, 4  ;;  %s42_s23 = sshll.u32 %s3045_s22, 4  ;;  %s21_s21 = int_to_ptr.vmem [resolvable:$true] %s20_s21  ;;  %s43_s23 = int_to_ptr.vmem [resolvable:$true] %s42_s23 }
  0x27   :  { %s2942_s26 = scalar_lea.hbm %s3163_s0, 448 }
  0x28   :  { %p2943_p2 = scmp.ne.s32.totalorder %s3163_s0, %s2942_s26  ;;  %p2946_p3 = scmp.lt.u32.totalorder %s2942_s26, %s3163_s0 }
  0x2a   :  { %p2948_p4 = pnand %p2946_p3, %p2943_p2 }
  0x2c   :  { %2951 = shalt.err (!%p2948_p4)
}
  0x2d   :  { %s2952_s3 = scalar_lea.vmem %s21_s21, 448  ;;  %p2957_p6 = scmp.lt.s32.totalorder %s21_s21, %s21_s21 }
  0x2e   :  { %p2953_p5 = scmp.ne.s32.totalorder %s21_s21, %s2952_s3  ;;  %p2958_p7 = scmp.lt.s32.totalorder %s2952_s3, %s2952_s3 }
  0x30   :  { %p2959_p8 = por %p2958_p7, %p2957_p6 }
  0x32   :  { %p2960_p9 = pnand %p2959_p8, %p2953_p5 }
  0x34   :  { %2963 = shalt.err (!%p2960_p9)
}
  0x35   :  { %23 = dma.hbm_to_vmem [thread:$0]  %s3163_s0, 448, %s21_s21, [#allocation3]  }
  0x36   :  { %s2964_s10 = scalar_lea.hbm %s3165_s2, 64 }
  0x37   :  { %p2965_p10 = scmp.ne.s32.totalorder %s3165_s2, %s2964_s10  ;;  %p2968_p11 = scmp.lt.u32.totalorder %s2964_s10, %s3165_s2 }
  0x39   :  { %p2970_p12 = pnand %p2968_p11, %p2965_p10 }
  0x3b   :  { %2973 = shalt.err (!%p2970_p12)
}
  0x3c   :  { %s2974_s15 = scalar_lea.vmem %s43_s23, 64  ;;  %p2979_p0 = scmp.lt.s32.totalorder %s43_s23, %s43_s23 }
  0x3d   :  { %p2975_p13 = scmp.ne.s32.totalorder %s43_s23, %s2974_s15  ;;  %p2980_p1 = scmp.lt.s32.totalorder %s2974_s15, %s2974_s15 }
  0x3f   :  { %p2981_p2 = por %p2980_p1, %p2979_p0 }
  0x41   :  { %p2982_p3 = pnand %p2981_p2, %p2975_p13 }
  0x43   :  { %2985 = shalt.err (!%p2982_p3)
}
  0x44   :  { %45 = dma.hbm_to_vmem [thread:$0]  %s3165_s2, 64, %s43_s23, [#allocation6]  }
  0x45   :  { %s3046_s1 = smov [#allocation10]   ;;  %s2986_s20 = scalar_lea.hbm %s3167_s4, 16 }
  0x46   :  { %s64_s17 = sshll.u32 %s3046_s1, 4  ;;  %p2987_p4 = scmp.ne.s32.totalorder %s3167_s4, %s2986_s20  ;;  %s65_s17 = int_to_ptr.vmem [resolvable:$true] %s64_s17 }
  0x47   :  { %p2990_p5 = scmp.lt.u32.totalorder %s2986_s20, %s3167_s4 }
  0x49   :  { %p2992_p6 = pnand %p2990_p5, %p2987_p4 }
  0x4b   :  { %2995 = shalt.err (!%p2992_p6)
}
  0x4c   :  { %s2996_s26 = scalar_lea.vmem %s65_s17, 16  ;;  %s3000_s2 = scalar_lea.vmem %s65_s17, 32 }
  0x4d   :  { %p2997_p7 = scmp.ne.s32.totalorder %s65_s17, %s2996_s26  ;;  %p3001_p8 = scmp.lt.s32.totalorder %s65_s17, %s65_s17 }
  0x4e   :  { %p3002_p9 = scmp.lt.s32.totalorder %s3000_s2, %s2996_s26 }
  0x50   :  { %p3003_p10 = por %p3002_p9, %p3001_p8 }
  0x52   :  { %p3004_p11 = pnand %p3003_p10, %p2997_p7 }
  0x54   :  { %3007 = shalt.err (!%p3004_p11)
}
  0x55   :  { %67 = dma.hbm_to_vmem [thread:$0]  %s3167_s4, 16, %s65_s17, [#allocation9]  }
  0x56   :  { %3030 = dma.done.wait [#allocation3], 448  }
  0x57   :  { %3031 = vsyncadd [#allocation3], 4294966848 }
  0x58   :  { %3032 = dma.done.wait [#allocation6], 28736  }
  0x59   :  { %3033 = vsyncadd [#allocation6], 4294938560 }
  0x5a   :  { %3034 = dma.done.wait [#allocation9], 4112  }
  0x5b   :  { %3035 = vsyncadd [#allocation9], 4294963184  ;;  %v2523_v0 = vld [vmem:[#allocation5 + $0x4] ss:$16 sps:$4 sm:$0xff]   ;;  %v2525_v1 = vld [vmem:[#allocation5 + $0xc] ss:$16 sps:$4 sm:$0xff]  }
  0x5c   :  { %1479 = vmatprep.subr.bf16.mxu0 %v2523_v0  ;;  %v2527_v2 = vld [vmem:[#allocation5] ss:$16 sps:$4 sm:$0xff]   ;;  %v2528_v3 = vld [vmem:[#allocation5 + $0x8] ss:$16 sps:$4 sm:$0xff]   ;;  %1643 = vmatprep.subr.bf16.mxu1 %v2525_v1  ;;  %v2529_v4 = vld [vmem:[#allocation5 + $0x24] ss:$16 sps:$4 sm:$0xff]  }
  0x5d   :  { %1480 = vmatpush1.bf16.msra.mxu0 %v2527_v2  ;;  %1644 = vmatpush1.bf16.msra.mxu1 %v2528_v3  ;;  %v2531_v5 = vld [vmem:[#allocation5 + $0x2c] ss:$16 sps:$4 sm:$0xff]   ;;  %v2533_v6 = vld [vmem:[#allocation5 + $0x20] ss:$16 sps:$4 sm:$0xff]   ;;  %v2534_v7 = vld [vmem:[#allocation5 + $0x28] ss:$16 sps:$4 sm:$0xff]  }
  0x5e   :  { %1481 = vmatprep.subr.bf16.mxu0 %v2529_v4  ;;  %1645 = vmatprep.subr.bf16.mxu1 %v2531_v5  ;;  %v2535_v8 = vld [vmem:[#allocation5 + $0x44] ss:$16 sps:$4 sm:$0xff]   ;;  %v2537_v9 = vld [vmem:[#allocation5 + $0x4c] ss:$16 sps:$4 sm:$0xff]   ;;  %v2539_v10 = vld [vmem:[#allocation5 + $0x40] ss:$16 sps:$4 sm:$0xff]  }
  0x5f   :  { %v2540_v11 = vld [vmem:[#allocation5 + $0x48] ss:$16 sps:$4 sm:$0xff]   ;;  %v2541_v12 = vld [vmem:[#allocation5 + $0x64] ss:$16 sps:$4 sm:$0xff]   ;;  %v2543_v13 = vld [vmem:[#allocation5 + $0x6c] ss:$16 sps:$4 sm:$0xff]  }
  0x60   :  { %v2545_v14 = vld [vmem:[#allocation5 + $0x60] ss:$16 sps:$4 sm:$0xff]   ;;  %v2546_v15 = vld [vmem:[#allocation5 + $0x68] ss:$16 sps:$4 sm:$0xff]   ;;  %v2547_v16 = vld [vmem:[#allocation5 + $0x84] ss:$16 sps:$4 sm:$0xff]  }
  0x61   :  { %1482 = vmatpush1.bf16.msra.mxu0 %v2533_v6  ;;  %1646 = vmatpush1.bf16.msra.mxu1 %v2534_v7  ;;  %v2549_v17 = vld [vmem:[#allocation5 + $0x8c] ss:$16 sps:$4 sm:$0xff]   ;;  %v2551_v18 = vld [vmem:[#allocation5 + $0x80] ss:$16 sps:$4 sm:$0xff]   ;;  %v2552_v19 = vld [vmem:[#allocation5 + $0x88] ss:$16 sps:$4 sm:$0xff]  }
  0x62   :  { %1483 = vmatprep.subr.bf16.mxu0 %v2535_v8  ;;  %1647 = vmatprep.subr.bf16.mxu1 %v2537_v9  ;;  %v2553_v20 = vld [vmem:[#allocation5 + $0xa4] ss:$16 sps:$4 sm:$0xff]   ;;  %v2555_v21 = vld [vmem:[#allocation5 + $0xac] ss:$16 sps:$4 sm:$0xff]   ;;  %v2557_v22 = vld [vmem:[#allocation5 + $0xa0] ss:$16 sps:$4 sm:$0xff]  }
  0x63   :  { %v2558_v23 = vld [vmem:[#allocation5 + $0xa8] ss:$16 sps:$4 sm:$0xff]   ;;  %v2559_v24 = vld [vmem:[#allocation5 + $0xc4] ss:$16 sps:$4 sm:$0xff]   ;;  %v2561_v25 = vld [vmem:[#allocation5 + $0xcc] ss:$16 sps:$4 sm:$0xff]  }
  0x64   :  { %v2563_v26 = vld [vmem:[#allocation5 + $0xc0] ss:$16 sps:$4 sm:$0xff]   ;;  %v2564_v27 = vld [vmem:[#allocation5 + $0xc8] ss:$16 sps:$4 sm:$0xff]   ;;  %v2565_v28 = vld [vmem:[#allocation5 + $0xe4] ss:$16 sps:$4 sm:$0xff]  }
  0x65   :  { %1484 = vmatpush1.bf16.msra.mxu0 %v2539_v10  ;;  %1648 = vmatpush1.bf16.msra.mxu1 %v2540_v11  ;;  %v2567_v29 = vld [vmem:[#allocation5 + $0xec] ss:$16 sps:$4 sm:$0xff]   ;;  %v2569_v30 = vld [vmem:[#allocation5 + $0xe0] ss:$16 sps:$4 sm:$0xff]   ;;  %v2570_v31 = vld [vmem:[#allocation5 + $0xe8] ss:$16 sps:$4 sm:$0xff]  }
  0x66   :  { %1485 = vmatprep.subr.bf16.mxu0 %v2541_v12  ;;  %1649 = vmatprep.subr.bf16.mxu1 %v2543_v13  ;;  %v2571_v32 = vld [vmem:[#allocation5 + $0x104] ss:$16 sps:$4 sm:$0xff]   ;;  %v2573_v33 = vld [vmem:[#allocation5 + $0x10c] ss:$16 sps:$4 sm:$0xff]   ;;  %v2575_v34 = vld [vmem:[#allocation5 + $0x100] ss:$16 sps:$4 sm:$0xff]  }
  0x67   :  { %v2576_v35 = vld [vmem:[#allocation5 + $0x108] ss:$16 sps:$4 sm:$0xff]   ;;  %v2577_v36 = vld [vmem:[#allocation5 + $0x124] ss:$16 sps:$4 sm:$0xff]   ;;  %v2579_v37 = vld [vmem:[#allocation5 + $0x12c] ss:$16 sps:$4 sm:$0xff]  }
  0x68   :  { %v2581_v38 = vld [vmem:[#allocation5 + $0x120] ss:$16 sps:$4 sm:$0xff]   ;;  %v2582_v39 = vld [vmem:[#allocation5 + $0x128] ss:$16 sps:$4 sm:$0xff]   ;;  %v2583_v40 = vld [vmem:[#allocation5 + $0x144] ss:$16 sps:$4 sm:$0xff]  }
  0x69   :  { %1486 = vmatpush1.bf16.msra.mxu0 %v2545_v14  ;;  %1650 = vmatpush1.bf16.msra.mxu1 %v2546_v15  ;;  %v2585_v41 = vld [vmem:[#allocation5 + $0x14c] ss:$16 sps:$4 sm:$0xff]   ;;  %v2587_v42 = vld [vmem:[#allocation5 + $0x140] ss:$16 sps:$4 sm:$0xff]   ;;  %v2588_v43 = vld [vmem:[#allocation5 + $0x148] ss:$16 sps:$4 sm:$0xff]  }
  0x6a   :  { %1487 = vmatprep.subr.bf16.mxu0 %v2547_v16  ;;  %1651 = vmatprep.subr.bf16.mxu1 %v2549_v17  ;;  %v2589_v44 = vld [vmem:[#allocation5 + $0x164] ss:$16 sps:$4 sm:$0xff]   ;;  %v2591_v45 = vld [vmem:[#allocation5 + $0x16c] ss:$16 sps:$4 sm:$0xff]   ;;  %v2593_v47 = vld [vmem:[#allocation5 + $0x160] ss:$16 sps:$4 sm:$0xff]  }
  0x6b   :  { %v84_v46 = vld [vmem:[#allocation2] sm:$0xff]  ;;  %v2597_v51 = vld [vmem:[#allocation5 + $0x18c] ss:$16 sps:$4 sm:$0xff]   ;;  %v2599_v52 = vld [vmem:[#allocation5 + $0x180] ss:$16 sps:$4 sm:$0xff]   ;;  %s3048_s4 = smov [#allocation11]  }
  0x6c   :  { %v2177_v48 = vcombine.high %v84_v46, %v84_v46  ;;  %v2594_v49 = vld [vmem:[#allocation5 + $0x168] ss:$16 sps:$4 sm:$0xff]   ;;  %v2595_v50 = vld [vmem:[#allocation5 + $0x184] ss:$16 sps:$4 sm:$0xff]   ;;  %v2603_v55 = vld [vmem:[#allocation5 + $0x1ac] ss:$16 sps:$4 sm:$0xff]   ;;  %v2176_v4 = vcombine.low %v84_v46, %v84_v46 }
  0x6d   :  { %1488 = vmatpush1.bf16.msra.mxu0 %v2551_v18  ;;  %1652 = vmatpush1.bf16.msra.mxu1 %v2552_v19  ;;  %v2600_v53 = vld [vmem:[#allocation5 + $0x188] ss:$16 sps:$4 sm:$0xff]   ;;  %v2601_v54 = vld [vmem:[#allocation5 + $0x1a4] ss:$16 sps:$4 sm:$0xff]   ;;  %v2605_v56 = vld [vmem:[#allocation5 + $0x1a0] ss:$16 sps:$4 sm:$0xff]  }
  0x6e   :  { %1489 = vmatprep.subr.bf16.mxu0 %v2553_v20  ;;  %1653 = vmatprep.subr.bf16.mxu1 %v2555_v21  ;;  %v2606_v57 = vld [vmem:[#allocation5 + $0x1a8] ss:$16 sps:$4 sm:$0xff]   ;;  %v2607_v58 = vld [vmem:[#allocation5 + $0x1c4] ss:$16 sps:$4 sm:$0xff]   ;;  %v2609_v59 = vld [vmem:[#allocation5 + $0x1cc] ss:$16 sps:$4 sm:$0xff]  }
  0x6f   :  { %1511 = vmatprep.mubr.bf16.mxu0 %v2177_v48  ;;  %1675 = vmatprep.mubr.bf16.mxu1 %v2177_v48  ;;  %v2611_v60 = vld [vmem:[#allocation5 + $0x1c0] ss:$16 sps:$4 sm:$0xff]   ;;  %v2612_v61 = vld [vmem:[#allocation5 + $0x1c8] ss:$16 sps:$4 sm:$0xff]   ;;  %v2613_v62 = vld [vmem:[#allocation5 + $0x1e4] ss:$16 sps:$4 sm:$0xff]  }
  0x70   :  { %v2615_v63 = vld [vmem:[#allocation5 + $0x1ec] ss:$16 sps:$4 sm:$0xff]   ;;  %v2617_v0 = vld [vmem:[#allocation5 + $0x1e0] ss:$16 sps:$4 sm:$0xff]   ;;  %v2618_v1 = vld [vmem:[#allocation5 + $0x1e8] ss:$16 sps:$4 sm:$0xff]  }
  0x71   :  { %1490 = vmatpush1.bf16.msra.mxu0 %v2557_v22  ;;  %1654 = vmatpush1.bf16.msra.mxu1 %v2558_v23  ;;  %v2623_v2 = vld [vmem:[#allocation5 + $0x204] ss:$16 sps:$4 sm:$0xff]   ;;  %v2626_v3 = vld [vmem:[#allocation5 + $0x20c] ss:$16 sps:$4 sm:$0xff]   ;;  %v2621_v5 = vld [vmem:[#allocation5 + $0x200] ss:$16 sps:$4 sm:$0xff]  }
  0x72   :  { %1491 = vmatprep.subr.bf16.mxu0 %v2559_v24  ;;  %1655 = vmatprep.subr.bf16.mxu1 %v2561_v25  ;;  %v2624_v6 = vld [vmem:[#allocation5 + $0x208] ss:$16 sps:$4 sm:$0xff]   ;;  %v2629_v7 = vld [vmem:[#allocation5 + $0x224] ss:$16 sps:$4 sm:$0xff]   ;;  %v2632_v8 = vld [vmem:[#allocation5 + $0x22c] ss:$16 sps:$4 sm:$0xff]  }
  0x73   :  { %v2627_v9 = vld [vmem:[#allocation5 + $0x220] ss:$16 sps:$4 sm:$0xff]   ;;  %v2630_v10 = vld [vmem:[#allocation5 + $0x228] ss:$16 sps:$4 sm:$0xff]   ;;  %v2635_v11 = vld [vmem:[#allocation5 + $0x244] ss:$16 sps:$4 sm:$0xff]  }
  0x74   :  { %v2638_v12 = vld [vmem:[#allocation5 + $0x24c] ss:$16 sps:$4 sm:$0xff]   ;;  %v2633_v13 = vld [vmem:[#allocation5 + $0x240] ss:$16 sps:$4 sm:$0xff]   ;;  %v2636_v14 = vld [vmem:[#allocation5 + $0x248] ss:$16 sps:$4 sm:$0xff]  }
  0x75   :  { %1492 = vmatpush1.bf16.msra.mxu0 %v2563_v26  ;;  %1656 = vmatpush1.bf16.msra.mxu1 %v2564_v27  ;;  %v2641_v15 = vld [vmem:[#allocation5 + $0x264] ss:$16 sps:$4 sm:$0xff]   ;;  %v2644_v16 = vld [vmem:[#allocation5 + $0x26c] ss:$16 sps:$4 sm:$0xff]   ;;  %v2639_v17 = vld [vmem:[#allocation5 + $0x260] ss:$16 sps:$4 sm:$0xff]  }
  0x76   :  { %1493 = vmatprep.subr.bf16.mxu0 %v2565_v28  ;;  %1657 = vmatprep.subr.bf16.mxu1 %v2567_v29  ;;  %v2642_v18 = vld [vmem:[#allocation5 + $0x268] ss:$16 sps:$4 sm:$0xff]   ;;  %v2647_v19 = vld [vmem:[#allocation5 + $0x284] ss:$16 sps:$4 sm:$0xff]   ;;  %v2650_v20 = vld [vmem:[#allocation5 + $0x28c] ss:$16 sps:$4 sm:$0xff]  }
  0x77   :  { %v2645_v21 = vld [vmem:[#allocation5 + $0x280] ss:$16 sps:$4 sm:$0xff]   ;;  %v2648_v22 = vld [vmem:[#allocation5 + $0x288] ss:$16 sps:$4 sm:$0xff]   ;;  %v2653_v23 = vld [vmem:[#allocation5 + $0x2a4] ss:$16 sps:$4 sm:$0xff]  }
  0x78   :  { %v2656_v24 = vld [vmem:[#allocation5 + $0x2ac] ss:$16 sps:$4 sm:$0xff]   ;;  %v2651_v25 = vld [vmem:[#allocation5 + $0x2a0] ss:$16 sps:$4 sm:$0xff]   ;;  %v2654_v26 = vld [vmem:[#allocation5 + $0x2a8] ss:$16 sps:$4 sm:$0xff]  }
  0x79   :  { %1494 = vmatpush1.bf16.msra.mxu0 %v2569_v30  ;;  %1658 = vmatpush1.bf16.msra.mxu1 %v2570_v31  ;;  %v2659_v27 = vld [vmem:[#allocation5 + $0x2c4] ss:$16 sps:$4 sm:$0xff]   ;;  %v2662_v28 = vld [vmem:[#allocation5 + $0x2cc] ss:$16 sps:$4 sm:$0xff]   ;;  %v2657_v31 = vld [vmem:[#allocation5 + $0x2c0] ss:$16 sps:$4 sm:$0xff]  }
  0x7a   :  { %1495 = vmatprep.subr.bf16.mxu0 %v2571_v32  ;;  %1659 = vmatprep.subr.bf16.mxu1 %v2573_v33  ;;  %v3139_v29 = vld [vmem:[#allocation2 + $0x8] sm:$0xff]  ;;  %v2660_v32 = vld [vmem:[#allocation5 + $0x2c8] ss:$16 sps:$4 sm:$0xff]   ;;  %v2665_v33 = vld [vmem:[#allocation5 + $0x2e4] ss:$16 sps:$4 sm:$0xff]   ;;  %s2165_s28 = sshll.u32 %s3048_s4, 4  ;;  %s2166_s28 = int_to_ptr.vmem [resolvable:$true] %s2165_s28 }
  0x7b   :  { %v2179_v30 = vcombine.high %v3139_v29, %v3139_v29  ;;  %v2686_v46 = vld [vmem:[#allocation5 + $0x34c] ss:$16 sps:$4 sm:$0xff]   ;;  %v2684_v48 = vld [vmem:[#allocation5 + $0x348] ss:$16 sps:$4 sm:$0xff]   ;;  %s3008_s29 = scalar_lea.vmem %s2166_s28, 128  ;;  %p3013_p13 = scmp.lt.s32.totalorder %s2166_s28, %s2166_s28 }
  0x7c   :  { %p3009_p12 = scmp.ne.s32.totalorder %s2166_s28, %s3008_s29  ;;  %p3014_p0 = scmp.lt.s32.totalorder %s3008_s29, %s3008_s29 }
  0x7d   :  { %1496 = vmatpush1.bf16.msra.mxu0 %v2575_v34  ;;  %1660 = vmatpush1.bf16.msra.mxu1 %v2576_v35  ;;  %v2668_v34 = vld [vmem:[#allocation5 + $0x2ec] ss:$16 sps:$4 sm:$0xff]   ;;  %v2663_v35 = vld [vmem:[#allocation5 + $0x2e0] ss:$16 sps:$4 sm:$0xff]  }
  0x7e   :  { %1497 = vmatprep.subr.bf16.mxu0 %v2577_v36  ;;  %1661 = vmatprep.subr.bf16.mxu1 %v2579_v37  ;;  %v2666_v36 = vld [vmem:[#allocation5 + $0x2e8] ss:$16 sps:$4 sm:$0xff]   ;;  %v2671_v37 = vld [vmem:[#allocation5 + $0x304] ss:$16 sps:$4 sm:$0xff]   ;;  %p3015_p1 = por %p3014_p0, %p3013_p13 }
  0x80   :  { %p3016_p2 = pnand %p3015_p1, %p3009_p12 }
  0x81   :  { %1498 = vmatpush1.bf16.msra.mxu0 %v2581_v38  ;;  %1662 = vmatpush1.bf16.msra.mxu1 %v2582_v39  ;;  %v2674_v38 = vld [vmem:[#allocation5 + $0x30c] ss:$16 sps:$4 sm:$0xff]   ;;  %v2669_v39 = vld [vmem:[#allocation5 + $0x300] ss:$16 sps:$4 sm:$0xff]  }
  0x82   :  { %1499 = vmatprep.subr.bf16.mxu0 %v2583_v40  ;;  %1663 = vmatprep.subr.bf16.mxu1 %v2585_v41  ;;  %v2672_v40 = vld [vmem:[#allocation5 + $0x308] ss:$16 sps:$4 sm:$0xff]   ;;  %v2677_v41 = vld [vmem:[#allocation5 + $0x324] ss:$16 sps:$4 sm:$0xff]  }
  0x85   :  { %1500 = vmatpush1.bf16.msra.mxu0 %v2587_v42  ;;  %1664 = vmatpush1.bf16.msra.mxu1 %v2588_v43  ;;  %v2680_v42 = vld [vmem:[#allocation5 + $0x32c] ss:$16 sps:$4 sm:$0xff]   ;;  %v2675_v43 = vld [vmem:[#allocation5 + $0x320] ss:$16 sps:$4 sm:$0xff]  }
  0x86   :  { %1501 = vmatprep.subr.bf16.mxu0 %v2589_v44  ;;  %1665 = vmatprep.subr.bf16.mxu1 %v2591_v45  ;;  %v2678_v44 = vld [vmem:[#allocation5 + $0x328] ss:$16 sps:$4 sm:$0xff]   ;;  %v2683_v45 = vld [vmem:[#allocation5 + $0x344] ss:$16 sps:$4 sm:$0xff]  }
  0x89   :  { %1502 = vmatpush1.bf16.msra.mxu0 %v2593_v47  ;;  %1666 = vmatpush1.bf16.msra.mxu1 %v2594_v49  ;;  %v2681_v47 = vld [vmem:[#allocation5 + $0x340] ss:$16 sps:$4 sm:$0xff]   ;;  %v2689_v49 = vld [vmem:[#allocation5 + $0x364] ss:$16 sps:$4 sm:$0xff]  }
  0x8a   :  { %1503 = vmatprep.subr.bf16.mxu0 %v2595_v50  ;;  %1667 = vmatprep.subr.bf16.mxu1 %v2597_v51  ;;  %v2692_v50 = vld [vmem:[#allocation5 + $0x36c] ss:$16 sps:$4 sm:$0xff]   ;;  %v2687_v51 = vld [vmem:[#allocation5 + $0x360] ss:$16 sps:$4 sm:$0xff]  }
  0x8d   :  { %1504 = vmatpush1.bf16.msra.mxu0 %v2599_v52  ;;  %1668 = vmatpush1.bf16.msra.mxu1 %v2600_v53  ;;  %v2690_v52 = vld [vmem:[#allocation5 + $0x368] ss:$16 sps:$4 sm:$0xff]   ;;  %v2695_v53 = vld [vmem:[#allocation5 + $0x384] ss:$16 sps:$4 sm:$0xff]  }
  0x8e   :  { %1505 = vmatprep.subr.bf16.mxu0 %v2601_v54  ;;  %1669 = vmatprep.subr.bf16.mxu1 %v2603_v55  ;;  %v2698_v54 = vld [vmem:[#allocation5 + $0x38c] ss:$16 sps:$4 sm:$0xff]   ;;  %v2693_v55 = vld [vmem:[#allocation5 + $0x380] ss:$16 sps:$4 sm:$0xff]  }
  0x91   :  { %1506 = vmatpush1.bf16.msra.mxu0 %v2605_v56  ;;  %1670 = vmatpush1.bf16.msra.mxu1 %v2606_v57  ;;  %v2696_v56 = vld [vmem:[#allocation5 + $0x388] ss:$16 sps:$4 sm:$0xff]   ;;  %v2701_v57 = vld [vmem:[#allocation5 + $0x3a4] ss:$16 sps:$4 sm:$0xff]  }
  0x92   :  { %1507 = vmatprep.subr.bf16.mxu0 %v2607_v58  ;;  %1671 = vmatprep.subr.bf16.mxu1 %v2609_v59  ;;  %v2704_v58 = vld [vmem:[#allocation5 + $0x3ac] ss:$16 sps:$4 sm:$0xff]   ;;  %v2699_v59 = vld [vmem:[#allocation5 + $0x3a0] ss:$16 sps:$4 sm:$0xff]  }
  0x95   :  { %1508 = vmatpush1.bf16.msra.mxu0 %v2611_v60  ;;  %1672 = vmatpush1.bf16.msra.mxu1 %v2612_v61  ;;  %v2702_v60 = vld [vmem:[#allocation5 + $0x3a8] ss:$16 sps:$4 sm:$0xff]   ;;  %v2707_v61 = vld [vmem:[#allocation5 + $0x3c4] ss:$16 sps:$4 sm:$0xff]  }
  0x96   :  { %1509 = vmatprep.subr.bf16.mxu0 %v2613_v62  ;;  %1673 = vmatprep.subr.bf16.mxu1 %v2615_v63  ;;  %v2710_v62 = vld [vmem:[#allocation5 + $0x3cc] ss:$16 sps:$4 sm:$0xff]   ;;  %v2705_v63 = vld [vmem:[#allocation5 + $0x3c0] ss:$16 sps:$4 sm:$0xff]  }
  0x99   :  { %1510 = vmatpush1.bf16.msra.mxu0 %v2617_v0  ;;  %1674 = vmatpush1.bf16.msra.mxu1 %v2618_v1  ;;  %v2708_v0 = vld [vmem:[#allocation5 + $0x3c8] ss:$16 sps:$4 sm:$0xff]   ;;  %v2713_v1 = vld [vmem:[#allocation5 + $0x3e4] ss:$16 sps:$4 sm:$0xff]  }
  0x9a   :  { %1520 = vmatprep.subr.bf16.mxu0 %v2623_v2  ;;  %1684 = vmatprep.subr.bf16.mxu1 %v2626_v3  ;;  %v2716_v2 = vld [vmem:[#allocation5 + $0x3ec] ss:$16 sps:$4 sm:$0xff]   ;;  %v2711_v3 = vld [vmem:[#allocation5 + $0x3e0] ss:$16 sps:$4 sm:$0xff]  }
  0x9c   :  { %1512 = vmatmul.mubr.bf16.vlgmr.msra.gmra.mrb[0].mxu0 %v2176_v4  ;;  %1676 = vmatmul.mubr.bf16.vlgmr.msra.gmra.mrb[0].mxu1 %v2176_v4  ;;  %v2714_v4 = vld [vmem:[#allocation5 + $0x3e8] ss:$16 sps:$4 sm:$0xff]  }
  0x9d   :  { %1521 = vmatpush1.bf16.msra.mxu0 %v2621_v5  ;;  %1685 = vmatpush1.bf16.msra.mxu1 %v2624_v6  ;;  %v2721_v5 = vld [vmem:[#allocation5 + $0x404] ss:$16 sps:$4 sm:$0xff]   ;;  %v2724_v6 = vld [vmem:[#allocation5 + $0x40c] ss:$16 sps:$4 sm:$0xff]  }
  0x9e   :  { %1522 = vmatprep.subr.bf16.mxu0 %v2629_v7  ;;  %1686 = vmatprep.subr.bf16.mxu1 %v2632_v8  ;;  %v2178_v7 = vcombine.low %v3139_v29, %v3139_v29  ;;  %v2719_v8 = vld [vmem:[#allocation5 + $0x400] ss:$16 sps:$4 sm:$0xff]   ;;  %v2754_v29 = vld [vmem:[#allocation5 + $0x4ac] ss:$16 sps:$4 sm:$0xff]  }
  0x9f   :  { %1552 = vmatprep.mubr.bf16.mxu0 %v2179_v30  ;;  %1716 = vmatprep.mubr.bf16.mxu1 %v2179_v30  ;;  %v2749_v30 = vld [vmem:[#allocation5 + $0x4a0] ss:$16 sps:$4 sm:$0xff]  }
  0xa1   :  { %1523 = vmatpush1.bf16.msra.mxu0 %v2627_v9  ;;  %1687 = vmatpush1.bf16.msra.mxu1 %v2630_v10  ;;  %v2722_v9 = vld [vmem:[#allocation5 + $0x408] ss:$16 sps:$4 sm:$0xff]   ;;  %v2727_v10 = vld [vmem:[#allocation5 + $0x424] ss:$16 sps:$4 sm:$0xff]  }
  0xa2   :  { %1524 = vmatprep.subr.bf16.mxu0 %v2635_v11  ;;  %1688 = vmatprep.subr.bf16.mxu1 %v2638_v12  ;;  %v3145_v11 = vld [vmem:[#allocation2 + $0x10] sm:$0xff]  ;;  %v2730_v12 = vld [vmem:[#allocation5 + $0x42c] ss:$16 sps:$4 sm:$0xff]  }
  0xa5   :  { %1525 = vmatpush1.bf16.msra.mxu0 %v2633_v13  ;;  %1689 = vmatpush1.bf16.msra.mxu1 %v2636_v14  ;;  %v2181_v13 = vcombine.high %v3145_v11, %v3145_v11  ;;  %v2725_v14 = vld [vmem:[#allocation5 + $0x420] ss:$16 sps:$4 sm:$0xff]  }
  0xa6   :  { %1526 = vmatprep.subr.bf16.mxu0 %v2641_v15  ;;  %1690 = vmatprep.subr.bf16.mxu1 %v2644_v16  ;;  %v2728_v15 = vld [vmem:[#allocation5 + $0x428] ss:$16 sps:$4 sm:$0xff]   ;;  %v2733_v16 = vld [vmem:[#allocation5 + $0x444] ss:$16 sps:$4 sm:$0xff]  }
  0xa9   :  { %1527 = vmatpush1.bf16.msra.mxu0 %v2639_v17  ;;  %1691 = vmatpush1.bf16.msra.mxu1 %v2642_v18  ;;  %v2736_v17 = vld [vmem:[#allocation5 + $0x44c] ss:$16 sps:$4 sm:$0xff]   ;;  %v2731_v18 = vld [vmem:[#allocation5 + $0x440] ss:$16 sps:$4 sm:$0xff]  }
  0xaa   :  { %1528 = vmatprep.subr.bf16.mxu0 %v2647_v19  ;;  %1692 = vmatprep.subr.bf16.mxu1 %v2650_v20  ;;  %v2734_v19 = vld [vmem:[#allocation5 + $0x448] ss:$16 sps:$4 sm:$0xff]   ;;  %v2739_v20 = vld [vmem:[#allocation5 + $0x464] ss:$16 sps:$4 sm:$0xff]  }
  0xad   :  { %1529 = vmatpush1.bf16.msra.mxu0 %v2645_v21  ;;  %1693 = vmatpush1.bf16.msra.mxu1 %v2648_v22  ;;  %v2742_v21 = vld [vmem:[#allocation5 + $0x46c] ss:$16 sps:$4 sm:$0xff]   ;;  %v2737_v22 = vld [vmem:[#allocation5 + $0x460] ss:$16 sps:$4 sm:$0xff]  }
  0xae   :  { %1530 = vmatprep.subr.bf16.mxu0 %v2653_v23  ;;  %1694 = vmatprep.subr.bf16.mxu1 %v2656_v24  ;;  %v2740_v23 = vld [vmem:[#allocation5 + $0x468] ss:$16 sps:$4 sm:$0xff]   ;;  %v2745_v24 = vld [vmem:[#allocation5 + $0x484] ss:$16 sps:$4 sm:$0xff]  }
  0xb1   :  { %1531 = vmatpush1.bf16.msra.mxu0 %v2651_v25  ;;  %1695 = vmatpush1.bf16.msra.mxu1 %v2654_v26  ;;  %v2748_v25 = vld [vmem:[#allocation5 + $0x48c] ss:$16 sps:$4 sm:$0xff]   ;;  %v2743_v26 = vld [vmem:[#allocation5 + $0x480] ss:$16 sps:$4 sm:$0xff]  }
  0xb2   :  { %1532 = vmatprep.subr.bf16.mxu0 %v2659_v27  ;;  %1696 = vmatprep.subr.bf16.mxu1 %v2662_v28  ;;  %v2746_v27 = vld [vmem:[#allocation5 + $0x488] ss:$16 sps:$4 sm:$0xff]   ;;  %v2751_v28 = vld [vmem:[#allocation5 + $0x4a4] ss:$16 sps:$4 sm:$0xff]  }
  0xb5   :  { %1533 = vmatpush1.bf16.msra.mxu0 %v2657_v31  ;;  %1697 = vmatpush1.bf16.msra.mxu1 %v2660_v32  ;;  %v2752_v31 = vld [vmem:[#allocation5 + $0x4a8] ss:$16 sps:$4 sm:$0xff]   ;;  %v2757_v32 = vld [vmem:[#allocation5 + $0x4c4] ss:$16 sps:$4 sm:$0xff]  }
  0xb6   :  { %1534 = vmatprep.subr.bf16.mxu0 %v2665_v33  ;;  %1698 = vmatprep.subr.bf16.mxu1 %v2668_v34  ;;  %v2760_v33 = vld [vmem:[#allocation5 + $0x4cc] ss:$16 sps:$4 sm:$0xff]   ;;  %v2755_v34 = vld [vmem:[#allocation5 + $0x4c0] ss:$16 sps:$4 sm:$0xff]  }
  0xb9   :  { %1535 = vmatpush1.bf16.msra.mxu0 %v2663_v35  ;;  %1699 = vmatpush1.bf16.msra.mxu1 %v2666_v36  ;;  %v2758_v35 = vld [vmem:[#allocation5 + $0x4c8] ss:$16 sps:$4 sm:$0xff]   ;;  %v2763_v36 = vld [vmem:[#allocation5 + $0x4e4] ss:$16 sps:$4 sm:$0xff]  }
  0xba   :  { %1536 = vmatprep.subr.bf16.mxu0 %v2671_v37  ;;  %1700 = vmatprep.subr.bf16.mxu1 %v2674_v38  ;;  %v2766_v37 = vld [vmem:[#allocation5 + $0x4ec] ss:$16 sps:$4 sm:$0xff]   ;;  %v2761_v38 = vld [vmem:[#allocation5 + $0x4e0] ss:$16 sps:$4 sm:$0xff]  }
  0xbd   :  { %1537 = vmatpush1.bf16.msra.mxu0 %v2669_v39  ;;  %1701 = vmatpush1.bf16.msra.mxu1 %v2672_v40  ;;  %v2764_v39 = vld [vmem:[#allocation5 + $0x4e8] ss:$16 sps:$4 sm:$0xff]   ;;  %v2769_v40 = vld [vmem:[#allocation5 + $0x504] ss:$16 sps:$4 sm:$0xff]  }
  0xbe   :  { %1538 = vmatprep.subr.bf16.mxu0 %v2677_v41  ;;  %1702 = vmatprep.subr.bf16.mxu1 %v2680_v42  ;;  %v2772_v41 = vld [vmem:[#allocation5 + $0x50c] ss:$16 sps:$4 sm:$0xff]   ;;  %v2767_v42 = vld [vmem:[#allocation5 + $0x500] ss:$16 sps:$4 sm:$0xff]  }
  0xc1   :  { %1539 = vmatpush1.bf16.msra.mxu0 %v2675_v43  ;;  %1703 = vmatpush1.bf16.msra.mxu1 %v2678_v44  ;;  %v2770_v43 = vld [vmem:[#allocation5 + $0x508] ss:$16 sps:$4 sm:$0xff]   ;;  %v2775_v44 = vld [vmem:[#allocation5 + $0x524] ss:$16 sps:$4 sm:$0xff]  }
  0xc2   :  { %1540 = vmatprep.subr.bf16.mxu0 %v2683_v45  ;;  %1704 = vmatprep.subr.bf16.mxu1 %v2686_v46  ;;  %v2778_v45 = vld [vmem:[#allocation5 + $0x52c] ss:$16 sps:$4 sm:$0xff]   ;;  %v2773_v46 = vld [vmem:[#allocation5 + $0x520] ss:$16 sps:$4 sm:$0xff]  }
  0xc5   :  { %1541 = vmatpush1.bf16.msra.mxu0 %v2681_v47  ;;  %1705 = vmatpush1.bf16.msra.mxu1 %v2684_v48  ;;  %v2776_v47 = vld [vmem:[#allocation5 + $0x528] ss:$16 sps:$4 sm:$0xff]   ;;  %v2781_v48 = vld [vmem:[#allocation5 + $0x544] ss:$16 sps:$4 sm:$0xff]  }
  0xc6   :  { %1542 = vmatprep.subr.bf16.mxu0 %v2689_v49  ;;  %1706 = vmatprep.subr.bf16.mxu1 %v2692_v50  ;;  %v2784_v49 = vld [vmem:[#allocation5 + $0x54c] ss:$16 sps:$4 sm:$0xff]   ;;  %v2779_v50 = vld [vmem:[#allocation5 + $0x540] ss:$16 sps:$4 sm:$0xff]  }
  0xc9   :  { %1543 = vmatpush1.bf16.msra.mxu0 %v2687_v51  ;;  %1707 = vmatpush1.bf16.msra.mxu1 %v2690_v52  ;;  %v2782_v51 = vld [vmem:[#allocation5 + $0x548] ss:$16 sps:$4 sm:$0xff]   ;;  %v2787_v52 = vld [vmem:[#allocation5 + $0x564] ss:$16 sps:$4 sm:$0xff]  }
  0xca   :  { %1544 = vmatprep.subr.bf16.mxu0 %v2695_v53  ;;  %1708 = vmatprep.subr.bf16.mxu1 %v2698_v54  ;;  %v2790_v53 = vld [vmem:[#allocation5 + $0x56c] ss:$16 sps:$4 sm:$0xff]   ;;  %v2785_v54 = vld [vmem:[#allocation5 + $0x560] ss:$16 sps:$4 sm:$0xff]  }
  0xcd   :  { %1545 = vmatpush1.bf16.msra.mxu0 %v2693_v55  ;;  %1709 = vmatpush1.bf16.msra.mxu1 %v2696_v56  ;;  %v2788_v55 = vld [vmem:[#allocation5 + $0x568] ss:$16 sps:$4 sm:$0xff]   ;;  %v2793_v56 = vld [vmem:[#allocation5 + $0x584] ss:$16 sps:$4 sm:$0xff]  }
  0xce   :  { %1546 = vmatprep.subr.bf16.mxu0 %v2701_v57  ;;  %1710 = vmatprep.subr.bf16.mxu1 %v2704_v58  ;;  %v2796_v57 = vld [vmem:[#allocation5 + $0x58c] ss:$16 sps:$4 sm:$0xff]   ;;  %v2791_v58 = vld [vmem:[#allocation5 + $0x580] ss:$16 sps:$4 sm:$0xff]  }
  0xd1   :  { %1547 = vmatpush1.bf16.msra.mxu0 %v2699_v59  ;;  %1711 = vmatpush1.bf16.msra.mxu1 %v2702_v60  ;;  %v2794_v59 = vld [vmem:[#allocation5 + $0x588] ss:$16 sps:$4 sm:$0xff]   ;;  %v2799_v60 = vld [vmem:[#allocation5 + $0x5a4] ss:$16 sps:$4 sm:$0xff]  }
  0xd2   :  { %1548 = vmatprep.subr.bf16.mxu0 %v2707_v61  ;;  %1712 = vmatprep.subr.bf16.mxu1 %v2710_v62  ;;  %v2802_v61 = vld [vmem:[#allocation5 + $0x5ac] ss:$16 sps:$4 sm:$0xff]   ;;  %v2797_v62 = vld [vmem:[#allocation5 + $0x5a0] ss:$16 sps:$4 sm:$0xff]  }
  0xd5   :  { %1549 = vmatpush1.bf16.msra.mxu0 %v2705_v63  ;;  %1713 = vmatpush1.bf16.msra.mxu1 %v2708_v0  ;;  %v2800_v63 = vld [vmem:[#allocation5 + $0x5a8] ss:$16 sps:$4 sm:$0xff]   ;;  %v2805_v0 = vld [vmem:[#allocation5 + $0x5c4] ss:$16 sps:$4 sm:$0xff]  }
  0xd6   :  { %1550 = vmatprep.subr.bf16.mxu0 %v2713_v1  ;;  %1714 = vmatprep.subr.bf16.mxu1 %v2716_v2  ;;  %v2808_v1 = vld [vmem:[#allocation5 + $0x5cc] ss:$16 sps:$4 sm:$0xff]   ;;  %v2803_v2 = vld [vmem:[#allocation5 + $0x5c0] ss:$16 sps:$4 sm:$0xff]  }
  0xd9   :  { %1551 = vmatpush1.bf16.msra.mxu0 %v2711_v3  ;;  %1715 = vmatpush1.bf16.msra.mxu1 %v2714_v4  ;;  %v2806_v3 = vld [vmem:[#allocation5 + $0x5c8] ss:$16 sps:$4 sm:$0xff]   ;;  %v2811_v4 = vld [vmem:[#allocation5 + $0x5e4] ss:$16 sps:$4 sm:$0xff]  }
  0xda   :  { %1561 = vmatprep.subr.bf16.mxu0 %v2721_v5  ;;  %1725 = vmatprep.subr.bf16.mxu1 %v2724_v6  ;;  %v2814_v5 = vld [vmem:[#allocation5 + $0x5ec] ss:$16 sps:$4 sm:$0xff]   ;;  %v2809_v6 = vld [vmem:[#allocation5 + $0x5e0] ss:$16 sps:$4 sm:$0xff]  }
  0xdc   :  { %1553 = vmatmul.mubr.bf16.vlgmr.msra.gmra.mrb[0].mxu0 %v2178_v7  ;;  %1717 = vmatmul.mubr.bf16.vlgmr.msra.gmra.mrb[0].mxu1 %v2178_v7  ;;  %v2812_v7 = vld [vmem:[#allocation5 + $0x5e8] ss:$16 sps:$4 sm:$0xff]  }
  0xdd   :  { %1562 = vmatpush1.bf16.msra.mxu0 %v2719_v8  ;;  %1726 = vmatpush1.bf16.msra.mxu1 %v2722_v9  ;;  %v2819_v8 = vld [vmem:[#allocation5 + $0x604] ss:$16 sps:$4 sm:$0xff]   ;;  %v2822_v9 = vld [vmem:[#allocation5 + $0x60c] ss:$16 sps:$4 sm:$0xff]  }
  0xde   :  { %1563 = vmatprep.subr.bf16.mxu0 %v2727_v10  ;;  %1727 = vmatprep.subr.bf16.mxu1 %v2730_v12  ;;  %v2180_v10 = vcombine.low %v3145_v11, %v3145_v11  ;;  %v2817_v12 = vld [vmem:[#allocation5 + $0x600] ss:$16 sps:$4 sm:$0xff]  }
  0xdf   :  { %1593 = vmatprep.mubr.bf16.mxu0 %v2181_v13  ;;  %1757 = vmatprep.mubr.bf16.mxu1 %v2181_v13  ;;  %v2820_v13 = vld [vmem:[#allocation5 + $0x608] ss:$16 sps:$4 sm:$0xff]   ;;  %v2829_v11 = vld [vmem:[#allocation5 + $0x640] ss:$16 sps:$4 sm:$0xff]  }
  0xe1   :  { %1564 = vmatpush1.bf16.msra.mxu0 %v2725_v14  ;;  %1728 = vmatpush1.bf16.msra.mxu1 %v2728_v15  ;;  %v2825_v14 = vld [vmem:[#allocation5 + $0x624] ss:$16 sps:$4 sm:$0xff]   ;;  %v2828_v15 = vld [vmem:[#allocation5 + $0x62c] ss:$16 sps:$4 sm:$0xff]  }
  0xe2   :  { %1565 = vmatprep.subr.bf16.mxu0 %v2733_v16  ;;  %1729 = vmatprep.subr.bf16.mxu1 %v2736_v17  ;;  %v2823_v16 = vld [vmem:[#allocation5 + $0x620] ss:$16 sps:$4 sm:$0xff]   ;;  %v2826_v17 = vld [vmem:[#allocation5 + $0x628] ss:$16 sps:$4 sm:$0xff]  }
  0xe5   :  { %1566 = vmatpush1.bf16.msra.mxu0 %v2731_v18  ;;  %1730 = vmatpush1.bf16.msra.mxu1 %v2734_v19  ;;  %v2831_v18 = vld [vmem:[#allocation5 + $0x644] ss:$16 sps:$4 sm:$0xff]   ;;  %v2834_v19 = vld [vmem:[#allocation5 + $0x64c] ss:$16 sps:$4 sm:$0xff]  }
  0xe6   :  { %1567 = vmatprep.subr.bf16.mxu0 %v2739_v20  ;;  %1731 = vmatprep.subr.bf16.mxu1 %v2742_v21  ;;  %v3047_v20 = vmov 0   ;;  %v2832_v21 = vld [vmem:[#allocation5 + $0x648] ss:$16 sps:$4 sm:$0xff]  }
  0xe9   :  { %1568 = vmatpush1.bf16.msra.mxu0 %v2737_v22  ;;  %1732 = vmatpush1.bf16.msra.mxu1 %v2740_v23  ;;  %v2837_v22 = vld [vmem:[#allocation5 + $0x664] ss:$16 sps:$4 sm:$0xff]   ;;  %v2840_v23 = vld [vmem:[#allocation5 + $0x66c] ss:$16 sps:$4 sm:$0xff]  }
  0xea   :  { %1569 = vmatprep.subr.bf16.mxu0 %v2745_v24  ;;  %1733 = vmatprep.subr.bf16.mxu1 %v2748_v25  ;;  %v2835_v24 = vld [vmem:[#allocation5 + $0x660] ss:$16 sps:$4 sm:$0xff]   ;;  %v2838_v25 = vld [vmem:[#allocation5 + $0x668] ss:$16 sps:$4 sm:$0xff]  }
  0xed   :  { %1570 = vmatpush1.bf16.msra.mxu0 %v2743_v26  ;;  %1734 = vmatpush1.bf16.msra.mxu1 %v2746_v27  ;;  %v2843_v26 = vld [vmem:[#allocation5 + $0x684] ss:$16 sps:$4 sm:$0xff]   ;;  %v2846_v27 = vld [vmem:[#allocation5 + $0x68c] ss:$16 sps:$4 sm:$0xff]  }
  0xee   :  { %1571 = vmatprep.subr.bf16.mxu0 %v2751_v28  ;;  %1735 = vmatprep.subr.bf16.mxu1 %v2754_v29  ;;  %v2841_v28 = vld [vmem:[#allocation5 + $0x680] ss:$16 sps:$4 sm:$0xff]   ;;  %v2844_v29 = vld [vmem:[#allocation5 + $0x688] ss:$16 sps:$4 sm:$0xff]  }
  0xf1   :  { %1572 = vmatpush1.bf16.msra.mxu0 %v2749_v30  ;;  %1736 = vmatpush1.bf16.msra.mxu1 %v2752_v31  ;;  %v2849_v30 = vld [vmem:[#allocation5 + $0x6a4] ss:$16 sps:$4 sm:$0xff]   ;;  %v2852_v31 = vld [vmem:[#allocation5 + $0x6ac] ss:$16 sps:$4 sm:$0xff]  }
  0xf2   :  { %1573 = vmatprep.subr.bf16.mxu0 %v2757_v32  ;;  %1737 = vmatprep.subr.bf16.mxu1 %v2760_v33  ;;  %v2847_v32 = vld [vmem:[#allocation5 + $0x6a0] ss:$16 sps:$4 sm:$0xff]   ;;  %v2850_v33 = vld [vmem:[#allocation5 + $0x6a8] ss:$16 sps:$4 sm:$0xff]  }
  0xf5   :  { %1574 = vmatpush1.bf16.msra.mxu0 %v2755_v34  ;;  %1738 = vmatpush1.bf16.msra.mxu1 %v2758_v35  ;;  %v2855_v34 = vld [vmem:[#allocation5 + $0x6c4] ss:$16 sps:$4 sm:$0xff]   ;;  %v2858_v35 = vld [vmem:[#allocation5 + $0x6cc] ss:$16 sps:$4 sm:$0xff]  }
  0xf6   :  { %1575 = vmatprep.subr.bf16.mxu0 %v2763_v36  ;;  %1739 = vmatprep.subr.bf16.mxu1 %v2766_v37  ;;  %v2853_v36 = vld [vmem:[#allocation5 + $0x6c0] ss:$16 sps:$4 sm:$0xff]   ;;  %v2856_v37 = vld [vmem:[#allocation5 + $0x6c8] ss:$16 sps:$4 sm:$0xff]  }
  0xf9   :  { %1576 = vmatpush1.bf16.msra.mxu0 %v2761_v38  ;;  %1740 = vmatpush1.bf16.msra.mxu1 %v2764_v39  ;;  %v2861_v38 = vld [vmem:[#allocation5 + $0x6e4] ss:$16 sps:$4 sm:$0xff]   ;;  %v2864_v39 = vld [vmem:[#allocation5 + $0x6ec] ss:$16 sps:$4 sm:$0xff]  }
  0xfa   :  { %1577 = vmatprep.subr.bf16.mxu0 %v2769_v40  ;;  %1741 = vmatprep.subr.bf16.mxu1 %v2772_v41  ;;  %v2859_v40 = vld [vmem:[#allocation5 + $0x6e0] ss:$16 sps:$4 sm:$0xff]   ;;  %v2862_v41 = vld [vmem:[#allocation5 + $0x6e8] ss:$16 sps:$4 sm:$0xff]  }
  0xfd   :  { %1578 = vmatpush1.bf16.msra.mxu0 %v2767_v42  ;;  %1742 = vmatpush1.bf16.msra.mxu1 %v2770_v43  ;;  %v2866_v42 = vld [vmem:[#allocation8 + $0x40] sm:$0xff]  }
  0xfe   :  { %1579 = vmatprep.subr.bf16.mxu0 %v2775_v44  ;;  %1743 = vmatprep.subr.bf16.mxu1 %v2778_v45  ;;  %v2867_v43 = vld [vmem:[#allocation8 + $0xc0] sm:$0xff]   ;;  %v2865_v44 = vld [vmem:[#allocation2 + $0x18] ss:$0 sps:$4 sm:$0xff]  }
  0xff   :  { %v2868_v45 = vld [vmem:[#allocation8] sm:$0xff]  }
 0x101   :  { %1580 = vmatpush1.bf16.msra.mxu0 %v2773_v46  ;;  %1744 = vmatpush1.bf16.msra.mxu1 %v2776_v47  ;;  %v2869_v46 = vld [vmem:[#allocation8 + $0x80] sm:$0xff]   ;;  %v2870_v47 = vld [vmem:[#allocation8 + $0x48] sm:$0xff]  }
 0x102   :  { %1581 = vmatprep.subr.bf16.mxu0 %v2781_v48  ;;  %1745 = vmatprep.subr.bf16.mxu1 %v2784_v49  ;;  %v2871_v48 = vld [vmem:[#allocation8 + $0xc8] sm:$0xff]  }
 0x103   :  { %v2872_v49 = vld [vmem:[#allocation8 + $0x8] sm:$0xff]  }
 0x105   :  { %1582 = vmatpush1.bf16.msra.mxu0 %v2779_v50  ;;  %1746 = vmatpush1.bf16.msra.mxu1 %v2782_v51  ;;  %v2873_v50 = vld [vmem:[#allocation8 + $0x88] sm:$0xff]   ;;  %v2874_v51 = vld [vmem:[#allocation8 + $0x50] sm:$0xff]  }
 0x106   :  { %1583 = vmatprep.subr.bf16.mxu0 %v2787_v52  ;;  %1747 = vmatprep.subr.bf16.mxu1 %v2790_v53  ;;  %v2875_v52 = vld [vmem:[#allocation8 + $0xd0] sm:$0xff]  }
 0x107   :  { %v2876_v53 = vld [vmem:[#allocation8 + $0x10] sm:$0xff]  }
 0x109   :  { %1584 = vmatpush1.bf16.msra.mxu0 %v2785_v54  ;;  %1748 = vmatpush1.bf16.msra.mxu1 %v2788_v55  ;;  %v2877_v54 = vld [vmem:[#allocation8 + $0x90] sm:$0xff]   ;;  %v2878_v55 = vld [vmem:[#allocation8 + $0x58] sm:$0xff]  }
 0x10a   :  { %1585 = vmatprep.subr.bf16.mxu0 %v2793_v56  ;;  %1749 = vmatprep.subr.bf16.mxu1 %v2796_v57  ;;  %v2879_v56 = vld [vmem:[#allocation8 + $0xd8] sm:$0xff]  }
 0x10b   :  { %v2880_v57 = vld [vmem:[#allocation8 + $0x18] sm:$0xff]  }
 0x10d   :  { %1586 = vmatpush1.bf16.msra.mxu0 %v2791_v58  ;;  %1750 = vmatpush1.bf16.msra.mxu1 %v2794_v59  ;;  %v2881_v58 = vld [vmem:[#allocation8 + $0x98] sm:$0xff]   ;;  %v2882_v59 = vld [vmem:[#allocation8 + $0x60] sm:$0xff]  }
 0x10e   :  { %1587 = vmatprep.subr.bf16.mxu0 %v2799_v60  ;;  %1751 = vmatprep.subr.bf16.mxu1 %v2802_v61  ;;  %v2883_v60 = vld [vmem:[#allocation8 + $0xe0] sm:$0xff]  }
 0x10f   :  { %v2884_v61 = vld [vmem:[#allocation8 + $0x20] sm:$0xff]  }
 0x111   :  { %1588 = vmatpush1.bf16.msra.mxu0 %v2797_v62  ;;  %1752 = vmatpush1.bf16.msra.mxu1 %v2800_v63  ;;  %v2885_v62 = vld [vmem:[#allocation8 + $0xa0] sm:$0xff]   ;;  %v2886_v63 = vld [vmem:[#allocation8 + $0x68] sm:$0xff]  }
 0x112   :  { %1589 = vmatprep.subr.bf16.mxu0 %v2805_v0  ;;  %1753 = vmatprep.subr.bf16.mxu1 %v2808_v1  ;;  %v2887_v0 = vld [vmem:[#allocation8 + $0xe8] sm:$0xff]  }
 0x113   :  { %v2888_v1 = vld [vmem:[#allocation8 + $0x28] sm:$0xff]  }
 0x115   :  { %1590 = vmatpush1.bf16.msra.mxu0 %v2803_v2  ;;  %1754 = vmatpush1.bf16.msra.mxu1 %v2806_v3  ;;  %v2889_v2 = vld [vmem:[#allocation8 + $0xa8] sm:$0xff]   ;;  %v2890_v3 = vld [vmem:[#allocation8 + $0x70] sm:$0xff]  }
 0x116   :  { %1591 = vmatprep.subr.bf16.mxu0 %v2811_v4  ;;  %1755 = vmatprep.subr.bf16.mxu1 %v2814_v5  ;;  %v2891_v4 = vld [vmem:[#allocation8 + $0xf0] sm:$0xff]  }
 0x117   :  { %v2892_v5 = vld [vmem:[#allocation8 + $0x30] sm:$0xff]  }
 0x119   :  { %1592 = vmatpush1.bf16.msra.mxu0 %v2809_v6  ;;  %1756 = vmatpush1.bf16.msra.mxu1 %v2812_v7  ;;  %v2893_v6 = vld [vmem:[#allocation8 + $0xb0] sm:$0xff]   ;;  %v2894_v7 = vld [vmem:[#allocation8 + $0x78] sm:$0xff]  }
 0x11a   :  { %1602 = vmatprep.subr.bf16.mxu0 %v2819_v8  ;;  %1766 = vmatprep.subr.bf16.mxu1 %v2822_v9  ;;  %v2895_v8 = vld [vmem:[#allocation8 + $0xf8] sm:$0xff]  }
 0x11b   :  { %v2896_v9 = vld [vmem:[#allocation8 + $0x38] sm:$0xff]  }
 0x11c   :  { %1594 = vmatmul.mubr.bf16.vlgmr.msra.gmra.mrb[0].mxu0 %v2180_v10  ;;  %1758 = vmatmul.mubr.bf16.vlgmr.msra.gmra.mrb[0].mxu1 %v2180_v10  ;;  %v2897_v10 = vld [vmem:[#allocation8 + $0xb8] sm:$0xff]  }
 0x11d   :  { %1603 = vmatpush1.bf16.msra.mxu0 %v2817_v12  ;;  %1767 = vmatpush1.bf16.msra.mxu1 %v2820_v13  ;;  %v314_v12 = vlaneseq }
 0x11e   :  { %1604 = vmatprep.subr.bf16.mxu0 %v2825_v14  ;;  %1768 = vmatprep.subr.bf16.mxu1 %v2828_v15 }
 0x11f   :  { %1634 = vmatprep.mubr.bf16.mxu0 %v3047_v20  ;;  %1798 = vmatprep.mubr.bf16.mxu1 %v3047_v20  ;;  %v315_v13 = vshrl.u32 %v314_v12, 7 }
 0x121   :  { %1605 = vmatpush1.bf16.msra.mxu0 %v2823_v16  ;;  %1769 = vmatpush1.bf16.msra.mxu1 %v2826_v17  ;;  %v316_v14 = vsub.s32 0, %v315_v13  ;;  %v324_v15 = vsub.s32 2, %v315_v13  ;;  %v312_v16 = vld [vmem:[#allocation7] sm:$0xf]  ;;  %v320_v17 = vsub.s32 1, %v315_v13 }
 0x122   :  { %1606 = vmatprep.subr.bf16.mxu0 %v2831_v18  ;;  %1770 = vmatprep.subr.bf16.mxu1 %v2834_v19  ;;  %v328_v18 = vsub.s32 3, %v315_v13 }
 0x123   :  { %v317_v19 = vrot.slane %v312_v16, %v316_v14  ;;  %v325_v20 = vrot.slane %v312_v16, %v324_v15 }
 0x125   :  { %1607 = vmatpush1.bf16.msra.mxu0 %v2829_v11  ;;  %1771 = vmatpush1.bf16.msra.mxu1 %v2832_v21  ;;  %v321_v11 = vrot.slane %v312_v16, %v320_v17  ;;  %v329_v21 = vrot.slane %v312_v16, %v328_v18 }
 0x126   :  { %1608 = vmatprep.subr.bf16.mxu0 %v2837_v22  ;;  %1772 = vmatprep.subr.bf16.mxu1 %v2840_v23 }
 0x129   :  { %1609 = vmatpush1.bf16.msra.mxu0 %v2835_v24  ;;  %1773 = vmatpush1.bf16.msra.mxu1 %v2838_v25 }
 0x12a   :  { %1610 = vmatprep.subr.bf16.mxu0 %v2843_v26  ;;  %1774 = vmatprep.subr.bf16.mxu1 %v2846_v27 }
 0x12d   :  { %1611 = vmatpush1.bf16.msra.mxu0 %v2841_v28  ;;  %1775 = vmatpush1.bf16.msra.mxu1 %v2844_v29 }
 0x12e   :  { %1612 = vmatprep.subr.bf16.mxu0 %v2849_v30  ;;  %1776 = vmatprep.subr.bf16.mxu1 %v2852_v31 }
 0x131   :  { %1613 = vmatpush1.bf16.msra.mxu0 %v2847_v32  ;;  %1777 = vmatpush1.bf16.msra.mxu1 %v2850_v33 }
 0x132   :  { %1614 = vmatprep.subr.bf16.mxu0 %v2855_v34  ;;  %1778 = vmatprep.subr.bf16.mxu1 %v2858_v35 }
 0x135   :  { %1615 = vmatpush1.bf16.msra.mxu0 %v2853_v36  ;;  %1779 = vmatpush1.bf16.msra.mxu1 %v2856_v37 }
 0x136   :  { %1616 = vmatprep.subr.bf16.mxu0 %v2861_v38  ;;  %1780 = vmatprep.subr.bf16.mxu1 %v2864_v39 }
 0x139   :  { %1617 = vmatpush1.bf16.msra.mxu0 %v2859_v40  ;;  %1781 = vmatpush1.bf16.msra.mxu1 %v2862_v41 }
 0x13a   :  { %2440 = vmatprep.subr.bf16.mxu0 %v2866_v42  ;;  %2462 = vmatprep.subr.bf16.mxu1 %v2867_v43 }
 0x13c   :  { %1635 = vmatmul.mubr.bf16.vlgmr.msra.gmra.mrb[0].mxu0 %v2865_v44  ;;  %1799 = vmatmul.mubr.bf16.vlgmr.msra.gmra.mrb[0].mxu1 %v2865_v44  ;;  %v2407_v44 = vld [vmem:[#allocation10] ss:$0 sm:$0xff] }
 0x13d   :  { %2441 = vmatpush3.bf16.msra.mxu0 %v2868_v45  ;;  %2463 = vmatpush3.bf16.msra.mxu1 %v2869_v46 }
 0x13e   :  { %2442 = vmatprep.subr.bf16.mxu0 %v2870_v47  ;;  %2464 = vmatprep.subr.bf16.mxu1 %v2871_v48 }
 0x141   :  { %2443 = vmatpush3.bf16.msra.mxu0 %v2872_v49  ;;  %2465 = vmatpush3.bf16.msra.mxu1 %v2873_v50 }
 0x142   :  { %2444 = vmatprep.subr.bf16.mxu0 %v2874_v51  ;;  %2466 = vmatprep.subr.bf16.mxu1 %v2875_v52 }
 0x145   :  { %2445 = vmatpush3.bf16.msra.mxu0 %v2876_v53  ;;  %2467 = vmatpush3.bf16.msra.mxu1 %v2877_v54 }
 0x146   :  { %2446 = vmatprep.subr.bf16.mxu0 %v2878_v55  ;;  %2468 = vmatprep.subr.bf16.mxu1 %v2879_v56 }
 0x149   :  { %2447 = vmatpush3.bf16.msra.mxu0 %v2880_v57  ;;  %2469 = vmatpush3.bf16.msra.mxu1 %v2881_v58 }
 0x14a   :  { %2448 = vmatprep.subr.bf16.mxu0 %v2882_v59  ;;  %2470 = vmatprep.subr.bf16.mxu1 %v2883_v60 }
 0x14d   :  { %2449 = vmatpush3.bf16.msra.mxu0 %v2884_v61  ;;  %2471 = vmatpush3.bf16.msra.mxu1 %v2885_v62 }
 0x14e   :  { %2450 = vmatprep.subr.bf16.mxu0 %v2886_v63  ;;  %2472 = vmatprep.subr.bf16.mxu1 %v2887_v0 }
 0x151   :  { %2451 = vmatpush3.bf16.msra.mxu0 %v2888_v1  ;;  %2473 = vmatpush3.bf16.msra.mxu1 %v2889_v2 }
 0x152   :  { %2452 = vmatprep.subr.bf16.mxu0 %v2890_v3  ;;  %2474 = vmatprep.subr.bf16.mxu1 %v2891_v4 }
 0x155   :  { %2453 = vmatpush3.bf16.msra.mxu0 %v2892_v5  ;;  %2475 = vmatpush3.bf16.msra.mxu1 %v2893_v6 }
 0x156   :  { %2454 = vmatprep.subr.bf16.mxu0 %v2894_v7  ;;  %2476 = vmatprep.subr.bf16.mxu1 %v2895_v8 }
 0x159   :  { %2455 = vmatpush3.bf16.msra.mxu0 %v2896_v9  ;;  %2477 = vmatpush3.bf16.msra.mxu1 %v2897_v10 }
 0x20f   :  { %v1636_v22 = vpop.f32.mrb[0].mxu0  ;;  %v1800_v23 = vpop.f32.mrb[0].mxu1 }
 0x210   :  { %v2484_v24 = vadd.f32 %v1636_v22, %v317_v19  ;;  %v2486_v25 = vadd.f32 %v1800_v23, %v325_v20  ;;  %v1638_v26 = vpop.f32.mrb[1].mxu0  ;;  %v1802_v27 = vpop.f32.mrb[1].mxu1 }
 0x211   :  { %v2485_v28 = vadd.f32 %v1638_v26, %v321_v11  ;;  %v2487_v29 = vadd.f32 %v1802_v27, %v329_v21  ;;  %v1640_v30 = vpop.f32.mrb[2].mxu0  ;;  %v1804_v31 = vpop.f32.mrb[2].mxu1 }
 0x212   :  { %v1807_v32 = vmax.f32 %v2484_v24, 0.0  ;;  %v1809_v33 = vmax.f32 %v2486_v25, 0.0  ;;  %v1641_v34 = vpop.f32.mrb[3].mxu0  ;;  %v1805_v35 = vpop.f32.mrb[3].mxu1 }
 0x213   :  { %v1808_v36 = vmax.f32 %v2485_v28, 0.0  ;;  %v1810_v37 = vmax.f32 %v2487_v29, 0.0 }
 0x214   :  { %v1811_v40 = vpack.c.bf16 %v1807_v32, %v1807_v32  ;;  %v1813_v41 = vpack.c.bf16 %v1809_v33, %v1809_v33 }
 0x215   :  { %v1812_v38 = vpack.c.bf16 %v1808_v36, %v1808_v36  ;;  %v1814_v39 = vpack.c.bf16 %v1810_v37, %v1810_v37 }
 0x217   :  { %2110 = vmatprep.mubr.bf16.mxu0 %v1812_v38  ;;  %2150 = vmatprep.mubr.bf16.mxu1 %v1814_v39 }
 0x218   :  { %2111 = vmatmul.mubr.bf16.vlgmr.msra.gmra.mrb[4].mxu0 %v1811_v40  ;;  %2151 = vmatmul.mubr.bf16.vlgmr.msra.gmra.mrb[4].mxu1 %v1813_v41 }
 0x2eb   :  { %v2456_v42 = vpop.f32.mrb[4].mxu0  ;;  %v2478_v43 = vpop.f32.mrb[4].mxu1 }
 0x2ec   :  { %v2457_v45 = vpop.f32.mrb[5].mxu0  ;;  %v2479_v46 = vpop.f32.mrb[5].mxu1 }
 0x2ed   :  { %v2458_v47 = vadd.f32 %v2457_v45, %v2456_v42  ;;  %v2480_v48 = vadd.f32 %v2479_v46, %v2478_v43  ;;  %v2459_v49 = vpop.f32.mrb[6].mxu0  ;;  %v2481_v50 = vpop.f32.mrb[6].mxu1 }
 0x2ee   :  { %v2460_v51 = vpop.f32.mrb[7].mxu0  ;;  %v2482_v52 = vpop.f32.mrb[7].mxu1 }
 0x2ef   :  { %v2113_v53 = vadd.f32 %v2458_v47, %v2407_v44 }
 0x2f1   :  { %v2153_v54 = vadd.f32 %v2480_v48, %v2113_v53 }
 0x2f3   :  { %2158 = vst [vmem:[#allocation11] sm:$0xff] %v2153_v54 }
 0x2f4   :  { %3019 = shalt.err (!%p3016_p2)
}
 0x2f5   :  { %s3020_s6 = scalar_lea.hbm %s3168_s5, 128 }
 0x2f6   :  { %p3021_p3 = scmp.ne.s32.totalorder %s3168_s5, %s3020_s6  ;;  %p3024_p4 = scmp.lt.u32.totalorder %s3020_s6, %s3168_s5 }
 0x2f8   :  { %p3026_p5 = pnand %p3024_p4, %p3021_p3 }
 0x2fa   :  { %3029 = shalt.err (!%p3026_p5)
}
 0x2fb   :  { %2168 = dma.vmem_to_hbm [thread:$0]  %s2166_s28, 128, %s3168_s5, [#allocation4]  }
 0x2fc   :  { %3036 = dma.done.wait [#allocation4], 128  }
 0x2fd   :  { %3037 = vsyncadd [#allocation4], 4294967168 }
 0x2fe   :  { %2172 = vsyncpa [#allocation3], 1 }
 0x2ff   :  { %2173 = vsyncpa [#allocation6], 1 }
 0x300   :  { %2174 = vsyncpa [#allocation9], 1 }
 0x301   :  { %2175 = vsyncpa [#allocation4], 1 }

</bundles_post_ra>
